<compile_context>
chip_gen: v7x
topology: tpu7x:2x2x1
jax: 0.10.0
libtpu: 0.0.40
codegen_flags: <defaults>
</compile_context>

<pallas_src>
import jax
import jax.numpy as jnp
from jax.experimental import pallas as pl
from jax.experimental.pallas import tpu as pltpu


def _round_up(v, m):
    return ((v + m - 1) // m) * m


def highway_kernel(x_ref, w_ref, b_ref, o_ref):
    E = o_ref.shape[-1]  # static

    x = x_ref[...]

    # One lane-dense MXU pass: [tb, E] @ [E, 2E] -> [tb, 2E], f32 accumulate,
    # shared bias add for both branches.
    y = jnp.dot(x, w_ref[...], preferred_element_type=jnp.float32) + b_ref[...]

    # Split the fused result into projection / gate halves (static slices).
    x_proj = jnp.maximum(y[:, :E], 0.0)                           # relu   (VPU)
    # sigmoid as exp + approx reciprocal: both sit on the EUP slot.
    x_gate = pl.reciprocal(1.0 + jnp.exp(-y[:, E:]), approx=True)

    # Highway combine in f32: out = x + gate * (proj - x)   (3 VALU ops,
    # no live (1 - gate) vreg).
    xf = x.astype(jnp.float32)
    o_ref[...] = (xf + x_gate * (x_proj - xf)).astype(o_ref.dtype)


def fuse_highway_params(w_proj, b_proj, w_gate, b_gate, *, param_dtype=jnp.bfloat16):
    """Fuse the two E->E linears into one [E, 2E] weight / [1, 2E] bias.

    Call ONCE at parameter-build time (not per forward): removes an XLA concat
    + HBM round trip from every invocation.  Weights are stored in bf16 for
    the MXU; the bias stays f32 since it is added to the f32 accumulator.
    """
    w_fused = jnp.concatenate([w_proj, w_gate], axis=1).astype(param_dtype)          # [E, 2E]
    b_fused = jnp.concatenate([b_proj, b_gate]).reshape(1, -1).astype(jnp.float32)   # [1, 2E]
    return w_fused, b_fused


def highway(x, w_fused, b_fused, *, block_b=4096, out_dtype=None):
    """Highway forward.

    x:        [B, E]  (bf16 preferred: halves the HBM traffic that bounds this
                       kernel; f32 also works)
    w_fused:  [E, 2E] = (proj | gate), stored [in, out]
    b_fused:  [1, 2E] f32
    """
    B, E = x.shape
    assert w_fused.shape == (E, 2 * E) and b_fused.shape == (1, 2 * E)
    out_dtype = x.dtype if out_dtype is None else out_dtype

    # Batch tile:
    #  * large tiles (default 4096 rows) amortize the ~0.35 us per-grid-step
    #    overhead and reach the HBM roofline;
    #  * for moderate B, cap at ceil(B/2) rounded to the sublane multiple so
    #    the grid has >= 2 tiles -> both v7x TensorCores get a tile
    #    (neutral on v5e/v6e);
    #  * tb == B (full-array block) is always layout-legal for tiny B.
    sub = 16 if x.dtype == jnp.bfloat16 else 8
    if B <= sub:
        tb = B
    else:
        tb = min(block_b, _round_up(pl.cdiv(B, 2), sub))
    grid = (pl.cdiv(B, tb),)

    # VMEM footprint: 2 buffers x (x tile + out tile) + one fused-weight copy.
    # tb=4096, E=64, bf16 -> ~2 MiB, far below v7x's 64 MiB physical VMEM; the
    # 32 MiB scoped limit only matters if block_b / E are pushed much larger.
    return pl.pallas_call(
        highway_kernel,
        out_shape=jax.ShapeDtypeStruct((B, E), out_dtype),
        grid_spec=pltpu.PrefetchScalarGridSpec(
            num_scalar_prefetch=0,
            grid=grid,
            in_specs=[
                # x: tiled over batch, pipelined (double-buffered) against MXU.
                pl.BlockSpec((tb, E), lambda i: (i, 0)),
                # Fused weight / bias: grid-invariant -> single-buffered,
                # DMA'd once and VMEM-resident for the whole grid.
                pl.BlockSpec((E, 2 * E), lambda i: (0, 0),
                             pipeline_mode=pl.Buffered(1)),
                pl.BlockSpec((1, 2 * E), lambda i: (0, 0),
                             pipeline_mode=pl.Buffered(1)),
            ],
            out_specs=pl.BlockSpec((tb, E), lambda i: (i, 0)),
        ),
        compiler_params=pltpu.CompilerParams(
            # Batch tiles are independent -> shard across TCs on v7x.
            dimension_semantics=("parallel",),
            vmem_limit_bytes=32 * 1024 * 1024,
        ),
    )(x, w_fused, b_fused)


def highway_ref(x, w_proj, b_proj, w_gate, b_gate):
    x_proj = jnp.maximum(x @ w_proj + b_proj, 0.0)
    x_gate = jax.nn.sigmoid(x @ w_gate + b_gate)
    return x_gate * x_proj + (1.0 - x_gate) * x


if __name__ == "__main__":
    key = jax.random.PRNGKey(0)
    word_embed_size = 64

    k_x, k_wp, k_bp, k_wg, k_bg, k_x2 = jax.random.split(key, 6)

    # Deterministic synthetic parameters (nn.Linear(E, E)-shaped, [in, out]).
    bound = 1.0 / jnp.sqrt(word_embed_size)
    w_proj = jax.random.uniform(k_wp, (word_embed_size, word_embed_size),
                                minval=-bound, maxval=bound, dtype=jnp.float32)
    b_proj = jax.random.uniform(k_bp, (word_embed_size,),
                                minval=-bound, maxval=bound, dtype=jnp.float32)
    w_gate = jax.random.uniform(k_wg, (word_embed_size, word_embed_size),
                                minval=-bound, maxval=bound, dtype=jnp.float32)
    b_gate = jax.random.uniform(k_bg, (word_embed_size,),
                                minval=-bound, maxval=bound, dtype=jnp.float32)

    # Fuse parameters once, outside the per-call path.
    w_fused, b_fused = fuse_highway_params(w_proj, b_proj, w_gate, b_gate)

    # Case 1: tiny batch (single full-array tile, grid=(1,)).
    batch_size = 8
    x_f32 = jax.random.normal(k_x, (batch_size, word_embed_size), dtype=jnp.float32)
    x = x_f32.astype(jnp.bfloat16)            # bf16 activation storage
    out = jax.block_until_ready(highway(x, w_fused, b_fused))
    ref = highway_ref(x_f32, w_proj, b_proj, w_gate, b_gate)
    assert out.shape == (batch_size, word_embed_size)
    assert out.dtype == jnp.bfloat16
    assert jnp.allclose(out.astype(jnp.float32), ref, atol=3e-2, rtol=3e-2), \
        "mismatch vs pure-JAX reference (tiny batch)"

    # Case 2: moderate batch -> 2 batch tiles (v7x megacore path) + ragged tail.
    batch_size2 = 40
    x2_f32 = jax.random.normal(k_x2, (batch_size2, word_embed_size), dtype=jnp.float32)
    x2 = x2_f32.astype(jnp.bfloat16)
    out2 = jax.block_until_ready(highway(x2, w_fused, b_fused))
    ref2 = highway_ref(x2_f32, w_proj, b_proj, w_gate, b_gate)
    assert out2.shape == (batch_size2, word_embed_size)
    assert jnp.allclose(out2.astype(jnp.float32), ref2, atol=3e-2, rtol=3e-2), \
        "mismatch vs pure-JAX reference (tiled batch)"

    print("KERNEL_OK")
</pallas_src>

<mosaic_0001>
module attributes {stable_mosaic.version = 11 : i64} {
  func.func @highway_kernel(%arg0: i32, %arg1: memref<8x64xbf16, #tpu.memory_space<vmem>>, %arg2: memref<64x128xbf16, #tpu.memory_space<vmem>>, %arg3: memref<1x128xf32, #tpu.memory_space<vmem>>, %arg4: memref<8x64xbf16, #tpu.memory_space<vmem>>) attributes {dimension_semantics = [#tpu.dimension_semantics<parallel>], iteration_bounds = array<i64: 1>, scalar_prefetch = 0 : i64, scratch_operands = 0 : i64, tpu.core_type = #tpu.core_type<tc>, window_params = [{transform_indices = @transform_0, window_bounds = array<i64: 8, 64>}, {pipeline_mode = #tpu.pipeline_mode<synchronous>, transform_indices = @transform_1, window_bounds = array<i64: 64, 128>}, {pipeline_mode = #tpu.pipeline_mode<synchronous>, transform_indices = @transform_2, window_bounds = array<i64: 1, 128>}, {transform_indices = @transform_3, window_bounds = array<i64: 8, 64>}]} {
    %c0 = arith.constant 0 : index
    %c0_0 = arith.constant 0 : index
    %0 = vector.load %arg1[%c0, %c0_0] : memref<8x64xbf16, #tpu.memory_space<vmem>>, vector<8x64xbf16>
    %c0_1 = arith.constant 0 : index
    %c0_2 = arith.constant 0 : index
    %1 = vector.load %arg2[%c0_1, %c0_2] : memref<64x128xbf16, #tpu.memory_space<vmem>>, vector<64x128xbf16>
    %cst = arith.constant dense<0.000000e+00> : vector<8x128xf32>
    %2 = tpu.matmul %0, %1, %cst {dimension_numbers = #tpu.dot_dimension_numbers<[1], [0], [0], [1], [0, 0, 1, 1], [], []>} : vector<8x64xbf16>, vector<64x128xbf16>, vector<8x128xf32> -> vector<8x128xf32>
    %c0_3 = arith.constant 0 : index
    %c0_4 = arith.constant 0 : index
    %3 = vector.load %arg3[%c0_3, %c0_4] : memref<1x128xf32, #tpu.memory_space<vmem>>, vector<1x128xf32>
    %4 = vector.broadcast %3 : vector<1x128xf32> to vector<8x128xf32>
    %5 = arith.addf %2, %4 : vector<8x128xf32>
    %6 = vector.extract_strided_slice %5 {offsets = [0, 0], sizes = [8, 64], strides = [1, 1]} : vector<8x128xf32> to vector<8x64xf32>
    %cst_5 = arith.constant 0.000000e+00 : f32
    %7 = vector.broadcast %cst_5 : f32 to vector<8x64xf32>
    %8 = arith.maximumf %6, %7 : vector<8x64xf32>
    %9 = vector.extract_strided_slice %5 {offsets = [0, 64], sizes = [8, 64], strides = [1, 1]} : vector<8x128xf32> to vector<8x64xf32>
    %cst_6 = arith.constant 0.000000e+00 : f32
    %10 = vector.broadcast %cst_6 : f32 to vector<8x64xf32>
    %11 = arith.subf %10, %9 : vector<8x64xf32>
    %12 = math.exp %11 : vector<8x64xf32>
    %cst_7 = arith.constant 1.000000e+00 : f32
    %13 = vector.broadcast %cst_7 : f32 to vector<8x64xf32>
    %14 = arith.addf %13, %12 : vector<8x64xf32>
    %15 = tpu.reciprocal %14 {approx = true} : vector<8x64xf32> -> vector<8x64xf32>
    %16 = arith.extf %0 : vector<8x64xbf16> to vector<8x64xf32>
    %17 = arith.subf %8, %16 : vector<8x64xf32>
    %18 = arith.mulf %15, %17 : vector<8x64xf32>
    %19 = arith.addf %16, %18 : vector<8x64xf32>
    %20 = arith.truncf %19 : vector<8x64xf32> to vector<8x64xbf16>
    %c0_8 = arith.constant 0 : index
    %c0_9 = arith.constant 0 : index
    %21 = vector.load %arg4[%c0_8, %c0_9] : memref<8x64xbf16, #tpu.memory_space<vmem>>, vector<8x64xbf16>
    tpu.vector_store %arg4[%c0_8, %c0_9], %20 {strides = array<i32>} : memref<8x64xbf16, #tpu.memory_space<vmem>>, vector<8x64xbf16>,
    return
  }
  func.func @transform_0(%arg0: i32) -> (i32, i32) {
    %c0_i32 = arith.constant 0 : i32
    %c0_i32_0 = arith.constant 0 : i32
    return %arg0, %c0_i32 : i32, i32
  }
  func.func @transform_1(%arg0: i32) -> (i32, i32) {
    %c0_i32 = arith.constant 0 : i32
    %c0_i32_0 = arith.constant 0 : i32
    %c0_i32_1 = arith.constant 0 : i32
    return %c0_i32, %c0_i32_0 : i32, i32
  }
  func.func @transform_2(%arg0: i32) -> (i32, i32) {
    %c0_i32 = arith.constant 0 : i32
    %c0_i32_0 = arith.constant 0 : i32
    %c0_i32_1 = arith.constant 0 : i32
    return %c0_i32, %c0_i32_0 : i32, i32
  }
  func.func @transform_3(%arg0: i32) -> (i32, i32) {
    %c0_i32 = arith.constant 0 : i32
    %c0_i32_0 = arith.constant 0 : i32
    return %arg0, %c0_i32 : i32, i32
  }
}

</mosaic_0001>

<bundles_post_ra>
// kernel: tpu_custom_call.1
= control target key start
LH: loop header
LB: loop body
LE: loop exit
PB: predicated region body
PF: predicated region fallthrough
CT: control target
= control target key end

     0   :  { %8 = vsyncpa [#allocation3], 0  ;;  %s350_s0 = inlined_call_operand.hbm [shape: bf16[8,64], index: 0, kind: input, shape index: {}]   ;;  %s351_s1 = inlined_call_operand.hbm [shape: bf16[64,128], index: 1, kind: input, shape index: {}]   ;;  %s352_s2 = inlined_call_operand.vmem [shape: f32[1,128], index: 2, kind: input, shape index: {}]   ;;  %s353_s3 = inlined_call_operand.hbm [shape: bf16[8,64], index: 3, kind: output, shape index: {}]  }
   0x1   :  { %9 = vsyncpa [#allocation6], 0 }
   0x2   :  { %10 = vsyncpa [#allocation4], 0  ;;  %s273_s12 = smov [#allocation2]   ;;  %s274_s14 = smov [#allocation5]  }
   0x3   :  { %s17_s13 = sshll.u32 %s273_s12, 4  ;;  %s26_s15 = sshll.u32 %s274_s14, 4  ;;  %s18_s13 = int_to_ptr.vmem [resolvable:$true] %s17_s13  ;;  %s300_s15 = int_to_ptr.vmem [resolvable:$true] %s26_s15 }
   0x4   :  { %s201_s18 = scalar_lea.hbm %s350_s0, 64 }
   0x5   :  { %p202_p0 = scmp.ne.s32.totalorder %s350_s0, %s201_s18  ;;  %p205_p1 = scmp.lt.u32.totalorder %s201_s18, %s350_s0 }
   0x7   :  { %p207_p2 = pnand %p205_p1, %p202_p0 }
   0x9   :  { %210 = shalt.err (!%p207_p2)
}
   0xa   :  { %s211_s23 = scalar_lea.vmem %s18_s13, 64  ;;  %p216_p4 = scmp.lt.s32.totalorder %s18_s13, %s18_s13 }
   0xb   :  { %p212_p3 = scmp.ne.s32.totalorder %s18_s13, %s211_s23  ;;  %p217_p5 = scmp.lt.s32.totalorder %s211_s23, %s211_s23 }
   0xd   :  { %p218_p6 = por %p217_p5, %p216_p4 }
   0xf   :  { %p219_p7 = pnand %p218_p6, %p212_p3 }
  0x11   :  { %222 = shalt.err (!%p219_p7)
}
  0x12   :  { %20 = dma.hbm_to_vmem [thread:$0]  %s350_s0, 64, %s18_s13, [#allocation3]  }
  0x13   :  { %s223_s28 = scalar_lea.hbm %s351_s1, 512 }
  0x14   :  { %p224_p8 = scmp.ne.s32.totalorder %s351_s1, %s223_s28  ;;  %p227_p9 = scmp.lt.u32.totalorder %s223_s28, %s351_s1 }
  0x16   :  { %p229_p10 = pnand %p227_p9, %p224_p8 }
  0x18   :  { %232 = shalt.err (!%p229_p10)
}
  0x19   :  { %s233_s6 = scalar_lea.vmem %s300_s15, 512  ;;  %p238_p12 = scmp.lt.s32.totalorder %s300_s15, %s300_s15 }
  0x1a   :  { %p234_p11 = scmp.ne.s32.totalorder %s300_s15, %s233_s6  ;;  %p239_p13 = scmp.lt.s32.totalorder %s233_s6, %s233_s6 }
  0x1c   :  { %p240_p0 = por %p239_p13, %p238_p12 }
  0x1e   :  { %p241_p1 = pnand %p240_p0, %p234_p11 }
  0x20   :  { %244 = shalt.err (!%p241_p1)
}
  0x21   :  { %s275_s0 = smov 64   ;;  %s276_s7 = smov 4  }
  0x22   :  { %32 = dma.hbm_to_vmem [thread:$0]  %s351_s1, 512, %s300_s15, [#allocation6], %s275_s0, %s275_s0, %s276_s7  }
  0x23   :  { %267 = dma.done.wait [#allocation3], 64  }
  0x24   :  { %268 = vsyncadd [#allocation3], 4294967232 }
  0x25   :  { %269 = dma.done.wait [#allocation6], 512  }
  0x26   :  { %270 = vsyncadd [#allocation6], 4294966784  ;;  %v277_v0 = vmov 0.0   ;;  %vm278_vm0 = vmmov 0   ;;  %v193_v1 = vld [vmem:[#allocation5] sm:$0xff]   ;;  %v194_v2 = vld [vmem:[#allocation5 + $0x8] sm:$0xff]  }
  0x27   :  { %174 = vmatprep.subr.bf16.mxu0 %v277_v0  ;;  %182 = vmatprep.mubr.msk.bf16.mxu0 %vm278_vm0, %v277_v0  ;;  %v195_v3 = vld [vmem:[#allocation5 + $0x10] sm:$0xff]   ;;  %v196_v4 = vld [vmem:[#allocation5 + $0x18] sm:$0xff]   ;;  %vm82_vm1 = vcmask 523264   ;;  %vm145_vm2 = vcmask 519168  }
  0x28   :  { %175 = vmatpush3.bf16.msra.mxu0 %v193_v1  ;;  %v42_v5 = vld [vmem:[#allocation2] sm:$0xf] }
  0x29   :  { %176 = vmatprep.subr.bf16.mxu0 %v277_v0  ;;  %v163_v6 = vld [vmem:[%s352_s2] ss:$0 sm:$0xff]  ;;  %v132_v10 = vunpack.c.l.bf16 %v42_v5  ;;  %s279_s2 = smov [#allocation7]  }
  0x2a   :  { %s153_s11 = sshll.u32 %s279_s2, 4  ;;  %s154_s11 = int_to_ptr.vmem [resolvable:$true] %s153_s11 }
  0x2b   :  { %s245_s12 = scalar_lea.vmem %s154_s11, 64  ;;  %p250_p3 = scmp.lt.s32.totalorder %s154_s11, %s154_s11 }
  0x2c   :  { %177 = vmatpush3.bf16.msra.mxu0 %v194_v2  ;;  %p246_p2 = scmp.ne.s32.totalorder %s154_s11, %s245_s12  ;;  %p251_p4 = scmp.lt.s32.totalorder %s245_s12, %s245_s12 }
  0x2d   :  { %178 = vmatprep.subr.bf16.mxu0 %v277_v0 }
  0x2e   :  { %p252_p5 = por %p251_p4, %p250_p3 }
  0x30   :  { %179 = vmatpush3.bf16.msra.mxu0 %v195_v3  ;;  %p253_p6 = pnand %p252_p5, %p246_p2 }
  0x31   :  { %180 = vmatprep.subr.bf16.mxu0 %v277_v0 }
  0x34   :  { %181 = vmatpush3.bf16.msra.mxu0 %v196_v4 }
  0x37   :  { %183 = vmatmul.mubr.msk.bf16.vlgmr.msra.gmra.mrb[0].mxu0 %vm82_vm1, %v42_v5 }
 0x10a   :  { %v120_v7 = vpop.f32.mrb[0].mxu0 }
 0x10b   :  { %v121_v8 = vadd.f32 %v163_v6, %v120_v7  ;;  %v184_v9 = vpop.f32.mrb[1].mxu0 }
 0x10c   :  { %v123_v11 = vpop.f32.mrb[2].mxu0 }
 0x10d   :  { %v185_v12 = vpop.f32.mrb[3].mxu0  ;;  %v126_v13 = vmax.f32 %v121_v8, 0.0  ;;  %v127_v15 = vsub.f32 0.0, %v121_v8 }
 0x10f   :  { %v133_v14 = vsub.f32 %v126_v13, %v132_v10  ;;  %v128_v16 = vmul.f32 1.442695, %v127_v15 }
 0x111   :  { %135 = vrot.lane.b32.xlu0 %v133_v14, %s275_s0  ;;  %197 = vpow2.f32 %v128_v16 }
 0x11b   :  { %v198_v17 = vpop.eup %197 }
 0x11c   :  { %v130_v18 = vadd.f32 1.0, %v198_v17 }
 0x11e   :  { %199 = vrcp.f32 %v130_v18 }
 0x128   :  { %v200_v19 = vpop.eup %199 }
 0x183   :  { %v136_v20 = vpop.permute.xlu0 %135 }
 0x184   :  { %v138_v21 = vmul.f32 %v200_v19, %v136_v20 }
 0x186   :  { %140 = vrot.lane.b32.xlu0 %v138_v21, %s275_s0 }
 0x1f8   :  { %v141_v22 = vpop.permute.xlu0 %140 }
 0x1f9   :  { %v143_v23 = vadd.f32 %v141_v22, %v132_v10 }
 0x1fb   :  { %v144_v24 = vpack.c.bf16 %v143_v23, %v143_v23 }
 0x1fd   :  { %146 = vst.msk [vmem:[#allocation7] sm:$0xf] %vm145_vm2, %v144_v24 }
 0x1fe   :  { %256 = shalt.err (!%p253_p6)
}
 0x1ff   :  { %s257_s15 = scalar_lea.hbm %s353_s3, 64 }
 0x200   :  { %p258_p7 = scmp.ne.s32.totalorder %s353_s3, %s257_s15  ;;  %p261_p8 = scmp.lt.u32.totalorder %s257_s15, %s353_s3 }
 0x202   :  { %p263_p9 = pnand %p261_p8, %p258_p7 }
 0x204   :  { %266 = shalt.err (!%p263_p9)
}
 0x205   :  { %156 = dma.vmem_to_hbm [thread:$0]  %s154_s11, 64, %s353_s3, [#allocation4]  }
 0x206   :  { %271 = dma.done.wait [#allocation4], 64  }
 0x207   :  { %272 = vsyncadd [#allocation4], 4294967232 }
 0x208   :  { %160 = vsyncpa [#allocation3], 1 }
 0x209   :  { %161 = vsyncpa [#allocation6], 1 }
 0x20a   :  { %162 = vsyncpa [#allocation4], 1 }

</bundles_post_ra>
